<compile_context>
chip_gen: v7x
topology: tpu7x:2x2x1
jax: 0.10.0
libtpu: 0.0.40
codegen_flags: <defaults>
</compile_context>

<pallas_src>
import functools

import jax
import jax.numpy as jnp
from jax.experimental import pallas as pl
from jax.experimental.pallas import tpu as pltpu

_LANES = 128  # batch tile must be a multiple of this -> unmasked 128-wide stores


def value_kernel(x_ref, w1_ref, b1_ref, w2_ref, b2_ref, out_ref, *, dot_dtype):
    # fc1 on the MXU (f32 accumulation).  The cast of the streamed f32 activations
    # to the MXU dtype happens here (VPU filler hidden under the DMA).
    x = x_ref[...].astype(dot_dtype)                                    # (tb, S)
    h = jnp.dot(x, w1_ref[...], preferred_element_type=jnp.float32)     # (tb, H)
    h = jnp.maximum(h + b1_ref[...], 0.0)                               # f32 bias + ReLU
    # fc2 head computed transposed: (1, H) @ (H, tb) -> (1, tb).  Batch is the
    # lane axis of the result, so the output is lane-dense with zero padding.
    v = jnp.dot(w2_ref[...], h.T, preferred_element_type=jnp.float32)   # (1, tb)
    out_ref[...] = v + b2_ref[...]                                      # + (1, 1)


def _round_up(x, m):
    return ((x + m - 1) // m) * m


def init_linear_params(key, in_features, out_features):
    # Mimic torch.nn.Linear default init: U(-1/sqrt(in), 1/sqrt(in)).
    k_w, k_b = jax.random.split(key)
    bound = 1.0 / jnp.sqrt(jnp.float32(in_features))
    # Stored as (in, out) so the kernel computes x @ W (transpose of torch's (out, in)).
    w = jax.random.uniform(k_w, (in_features, out_features), jnp.float32, -bound, bound)
    b = jax.random.uniform(k_b, (1, out_features), jnp.float32, -bound, bound)
    return w, b


@functools.partial(jax.jit, static_argnames=("block_b", "dot_dtype"))
def value_network_forward(state, w1, b1, w2, b2, *, block_b=2048,
                          dot_dtype=jnp.bfloat16):
    B, state_dim = state.shape
    H = w1.shape[1]
    f32 = jnp.float32

    # --- batch tiling ---------------------------------------------------------
    # tb is a multiple of 128 so the (1, tb) output blocks are lane-dense.  Cap it
    # at ceil(B/2) (rounded up to 128) so there are >= 2 grid steps whenever
    # B > 128, using both TensorCores on v7x.  The input is NOT padded: the ragged
    # boundary block is handled by Pallas, and its garbage rows only feed output
    # lanes >= B which are sliced away.
    tb = min(_round_up(block_b, _LANES), _round_up(pl.cdiv(B, 2), _LANES))
    tb = max(tb, _LANES)
    b_pad = _round_up(B, tb)          # padded output columns only
    grid = (b_pad // tb,)

    w1c = w1.astype(dot_dtype)        # tiny resident weight, cast once here
    b1c = b1.astype(f32)              # (1, H)  f32 epilogue (v5e-friendly)
    w2t = w2.astype(f32).T            # (1, H)  fc2 head row, stays f32 (exact)
    b2c = b2.astype(f32)              # (1, 1)

    cost = pl.CostEstimate(
        flops=2 * b_pad * H * (state_dim + 1),
        transcendentals=0,
        bytes_accessed=(state.size * state.dtype.itemsize
                        + w1c.size * w1c.dtype.itemsize
                        + (b1c.size + w2t.size + b2c.size) * 4
                        + b_pad * 4),
    )

    out = pl.pallas_call(
        functools.partial(value_kernel, dot_dtype=dot_dtype),
        out_shape=jax.ShapeDtypeStruct((1, b_pad), f32),
        grid=grid,
        in_specs=[
            pl.BlockSpec((tb, state_dim), lambda i: (i, 0)),  # streamed activations
            pl.BlockSpec((state_dim, H), lambda i: (0, 0)),   # resident fc1 weight
            pl.BlockSpec((1, H), lambda i: (0, 0)),           # resident fc1 bias
            pl.BlockSpec((1, H), lambda i: (0, 0)),           # resident fc2 weight row
            pl.BlockSpec((1, 1), lambda i: (0, 0)),           # resident fc2 bias
        ],
        out_specs=pl.BlockSpec((1, tb), lambda i: (0, i)),
        compiler_params=pltpu.CompilerParams(
            dimension_semantics=("parallel",)),               # both TCs on v7x
        cost_estimate=cost,
    )(state, w1c, b1c, w2t, b2c)

    # (1, b_pad) -> (B, 1); columns >= B are padding garbage and are dropped.
    return out[0, :B].reshape(B, 1)


if __name__ == "__main__":
    state_dim, hidden_dim = 8, 32
    batch = 2

    key = jax.random.PRNGKey(0)
    k_state, k_fc1, k_fc2 = jax.random.split(key, 3)

    state = jax.random.normal(k_state, (batch, state_dim), jnp.float32)
    w1, b1 = init_linear_params(k_fc1, state_dim, hidden_dim)
    w2, b2 = init_linear_params(k_fc2, hidden_dim, 1)

    # Exact f32 reference of the torch forward (fc1 -> ReLU -> fc2).
    h_ref = jnp.maximum(state @ w1 + b1, 0.0)
    v_ref = h_ref @ w2 + b2

    # 1) f32 MXU-input path: tight check against the f32 reference.
    v_f32 = jax.block_until_ready(
        value_network_forward(state, w1, b1, w2, b2, dot_dtype=jnp.float32))
    assert v_f32.shape == (batch, 1)
    assert jnp.allclose(v_f32, v_ref, atol=1e-4, rtol=1e-4)

    # 2) bf16 MXU-input path (perf default for v6e/v7x): check against a
    #    matching-cast reference, plus a loose sanity check vs exact f32 math.
    v_bf16 = jax.block_until_ready(
        value_network_forward(state, w1, b1, w2, b2, dot_dtype=jnp.bfloat16))
    h16 = jnp.maximum(
        jnp.dot(state.astype(jnp.bfloat16), w1.astype(jnp.bfloat16),
                preferred_element_type=jnp.float32) + b1, 0.0)
    v_ref16 = h16 @ w2 + b2           # fc2 head stays f32 in the kernel as well
    assert v_bf16.shape == (batch, 1)
    assert jnp.allclose(v_bf16, v_ref16, atol=1e-3, rtol=1e-3)
    assert jnp.allclose(v_bf16, v_ref, atol=5e-2, rtol=0.0)

    print("KERNEL_OK")
</pallas_src>

<mosaic_0001>
module attributes {stable_mosaic.version = 11 : i64} {
  func.func @value_kernel(%arg0: i32, %arg1: memref<128x8xf32, #tpu.memory_space<vmem>>, %arg2: memref<8x32xf32, #tpu.memory_space<vmem>>, %arg3: memref<1x32xf32, #tpu.memory_space<vmem>>, %arg4: memref<1x32xf32, #tpu.memory_space<vmem>>, %arg5: memref<1x1xf32, #tpu.memory_space<vmem>>, %arg6: memref<1x128xf32, #tpu.memory_space<vmem>>) attributes {dimension_semantics = [#tpu.dimension_semantics<parallel>], iteration_bounds = array<i64: 1>, scalar_prefetch = 0 : i64, scratch_operands = 0 : i64, tpu.core_type = #tpu.core_type<tc>, window_params = [{transform_indices = @transform_0, window_bounds = array<i64: 128, 8>}, {pipeline_mode = #tpu.pipeline_mode<synchronous>, transform_indices = @transform_1, window_bounds = array<i64: 8, 32>}, {pipeline_mode = #tpu.pipeline_mode<synchronous>, transform_indices = @transform_2, window_bounds = array<i64: 1, 32>}, {pipeline_mode = #tpu.pipeline_mode<synchronous>, transform_indices = @transform_3, window_bounds = array<i64: 1, 32>}, {pipeline_mode = #tpu.pipeline_mode<synchronous>, transform_indices = @transform_4, window_bounds = array<i64: 1, 1>}, {transform_indices = @transform_5, window_bounds = array<i64: 1, 128>}]} {
    %c0 = arith.constant 0 : index
    %c0_0 = arith.constant 0 : index
    %0 = vector.load %arg1[%c0, %c0_0] : memref<128x8xf32, #tpu.memory_space<vmem>>, vector<128x8xf32>
    %c0_1 = arith.constant 0 : index
    %c0_2 = arith.constant 0 : index
    %1 = vector.load %arg2[%c0_1, %c0_2] : memref<8x32xf32, #tpu.memory_space<vmem>>, vector<8x32xf32>
    %cst = arith.constant dense<0.000000e+00> : vector<128x32xf32>
    %2 = tpu.matmul %0, %1, %cst {dimension_numbers = #tpu.dot_dimension_numbers<[1], [0], [0], [1], [0, 0, 1, 1], [], []>} : vector<128x8xf32>, vector<8x32xf32>, vector<128x32xf32> -> vector<128x32xf32>
    %c0_3 = arith.constant 0 : index
    %c0_4 = arith.constant 0 : index
    %3 = vector.load %arg3[%c0_3, %c0_4] : memref<1x32xf32, #tpu.memory_space<vmem>>, vector<1x32xf32>
    %4 = vector.broadcast %3 : vector<1x32xf32> to vector<128x32xf32>
    %5 = arith.addf %2, %4 : vector<128x32xf32>
    %cst_5 = arith.constant 0.000000e+00 : f32
    %6 = vector.broadcast %cst_5 : f32 to vector<128x32xf32>
    %7 = arith.maximumf %5, %6 : vector<128x32xf32>
    %c0_6 = arith.constant 0 : index
    %c0_7 = arith.constant 0 : index
    %8 = vector.load %arg4[%c0_6, %c0_7] : memref<1x32xf32, #tpu.memory_space<vmem>>, vector<1x32xf32>
    %9 = tpu.transpose %7, [1, 0] : vector<128x32xf32> -> vector<32x128xf32>
    %cst_8 = arith.constant dense<0.000000e+00> : vector<1x128xf32>
    %10 = tpu.matmul %8, %9, %cst_8 {dimension_numbers = #tpu.dot_dimension_numbers<[1], [0], [0], [1], [0, 0, 1, 1], [], []>} : vector<1x32xf32>, vector<32x128xf32>, vector<1x128xf32> -> vector<1x128xf32>
    %c0_9 = arith.constant 0 : index
    %c0_10 = arith.constant 0 : index
    %11 = vector.load %arg5[%c0_9, %c0_10] : memref<1x1xf32, #tpu.memory_space<vmem>>, vector<1x1xf32>
    %12 = vector.broadcast %11 : vector<1x1xf32> to vector<1x128xf32>
    %13 = arith.addf %10, %12 : vector<1x128xf32>
    %c0_11 = arith.constant 0 : index
    %c0_12 = arith.constant 0 : index
    %14 = vector.load %arg6[%c0_11, %c0_12] : memref<1x128xf32, #tpu.memory_space<vmem>>, vector<1x128xf32>
    tpu.vector_store %arg6[%c0_11, %c0_12], %13 {strides = array<i32>} : memref<1x128xf32, #tpu.memory_space<vmem>>, vector<1x128xf32>,
    return
  }
  func.func @transform_0(%arg0: i32) -> (i32, i32) {
    %c0_i32 = arith.constant 0 : i32
    %c0_i32_0 = arith.constant 0 : i32
    return %arg0, %c0_i32 : i32, i32
  }
  func.func @transform_1(%arg0: i32) -> (i32, i32) {
    %c0_i32 = arith.constant 0 : i32
    %c0_i32_0 = arith.constant 0 : i32
    %c0_i32_1 = arith.constant 0 : i32
    return %c0_i32, %c0_i32_0 : i32, i32
  }
  func.func @transform_2(%arg0: i32) -> (i32, i32) {
    %c0_i32 = arith.constant 0 : i32
    %c0_i32_0 = arith.constant 0 : i32
    %c0_i32_1 = arith.constant 0 : i32
    return %c0_i32, %c0_i32_0 : i32, i32
  }
  func.func @transform_3(%arg0: i32) -> (i32, i32) {
    %c0_i32 = arith.constant 0 : i32
    %c0_i32_0 = arith.constant 0 : i32
    %c0_i32_1 = arith.constant 0 : i32
    return %c0_i32, %c0_i32_0 : i32, i32
  }
  func.func @transform_4(%arg0: i32) -> (i32, i32) {
    %c0_i32 = arith.constant 0 : i32
    %c0_i32_0 = arith.constant 0 : i32
    %c0_i32_1 = arith.constant 0 : i32
    return %c0_i32, %c0_i32_0 : i32, i32
  }
  func.func @transform_5(%arg0: i32) -> (i32, i32) {
    %c0_i32 = arith.constant 0 : i32
    %c0_i32_0 = arith.constant 0 : i32
    return %c0_i32, %arg0 : i32, i32
  }
}

</mosaic_0001>

<bundles_post_ra>
// kernel: value_network_forward.1
= control target key start
LH: loop header
LB: loop body
LE: loop exit
PB: predicated region body
PF: predicated region fallthrough
CT: control target
= control target key end

     0   :  { %vm46_vm0 = vcmask 64512   ;;  %v560_v17 = vmov 0.0|0.0   ;;  %vm561_vm1 = vmmov 0   ;;  %v562_v18 = vmov 0.0   ;;  %s704_s1 = inlined_call_operand.vmem [shape: f32[8,32], index: 1, kind: input, shape index: {}]   ;;  %s705_s0 = inlined_call_operand.vmem [shape: f32[2,8], index: 0, kind: input, shape index: {}]   ;;  %s706_s4 = inlined_call_operand.<no memory space> [shape: f32[1,1], index: 4, kind: input, shape index: {}]   ;;  %s707_s2 = inlined_call_operand.vmem [shape: f32[1,32], index: 2, kind: input, shape index: {}]   ;;  %s708_s3 = inlined_call_operand.vmem [shape: f32[1,32], index: 3, kind: input, shape index: {}]   ;;  %s709_s5 = inlined_call_operand.vmem [shape: f32[1,128], index: 5, kind: output, shape index: {}]  }
   0x1   :  { %v38_v0 = vld [vmem:[%s704_s1] sm:$0xff]  ;;  %v23_v2 = vld [vmem:[%s705_s0 + $0x8] sm:$0xff]  ;;  %v24_v3 = vld [vmem:[%s705_s0 + $0x10] sm:$0xff]  ;;  %523 = vmatprep.subr.bf16.mxu1 %v560_v17  ;;  %520 = vmatprep.mubr.msk.f32.mxu1 %vm561_vm1, %v562_v18  ;;  %v563_v19 = vmov 0   ;;  %v10_v20 = vstv %s706_s4  ;;  %vm267_vm2 = vcmask 261120   ;;  %v263_v18 = vlaneseq }
   0x2   :  { %v22_v1 = vld [vmem:[%s705_s0] sm:$0xff]  ;;  %462 = vmatprep.subr.mxu0 %v38_v0  ;;  %v25_v4 = vld [vmem:[%s705_s0 + $0x18] sm:$0xff]  ;;  %v27_v6 = vld [vmem:[%s705_s0 + $0x28] sm:$0xff]  ;;  %559 = vset.pattern.permute.xlu0 %v563_v19  ;;  %11 = vst [vmem:[#allocation2] sm:$0x1] %v10_v20 }
   0x3   :  { %464 = vmatprep.mubr.msk.f32.mxu0 %vm46_vm0, %v22_v1  ;;  %463 = vmatpush3.msra.mxu0 %v38_v0  ;;  %v26_v5 = vld [vmem:[%s705_s0 + $0x20] sm:$0xff]  ;;  %v28_v7 = vld [vmem:[%s705_s0 + $0x30] sm:$0xff]  ;;  %v29_v8 = vld [vmem:[%s705_s0 + $0x38] sm:$0xff]  ;;  %v264_v19 = vshrl.u32 %v263_v18, 7 }
   0x4   :  { %465 = vmatmul.mubr.msk.f32.vlgmr.msra.gmra.mrb[0].mxu0 %vm46_vm0, %v23_v2  ;;  %v30_v9 = vld [vmem:[%s705_s0 + $0x40] sm:$0xff]  ;;  %v31_v10 = vld [vmem:[%s705_s0 + $0x48] sm:$0xff]  ;;  %v32_v11 = vld [vmem:[%s705_s0 + $0x50] sm:$0xff] }
   0x5   :  { %467 = vmatprep.mubr.msk.f32.mxu0 %vm46_vm0, %v24_v3  ;;  %v33_v12 = vld [vmem:[%s705_s0 + $0x58] sm:$0xff]  ;;  %v34_v13 = vld [vmem:[%s705_s0 + $0x60] sm:$0xff]  ;;  %v35_v14 = vld [vmem:[%s705_s0 + $0x68] sm:$0xff]  ;;  %v265_v20 = vsub.s32 0, %v264_v19 }
   0x6   :  { %v36_v15 = vld [vmem:[%s705_s0 + $0x70] sm:$0xff]  ;;  %v37_v16 = vld [vmem:[%s705_s0 + $0x78] sm:$0xff]  ;;  %v394_v22 = vld [vmem:[%s707_s2] ss:$0 sm:$0xff] }
   0x7   :  { %vm670_vm3 = vmpackc.low %vm267_vm2, %vm267_vm2 }
   0x8   :  { %468 = vmatmul.mubr.msk.f32.gmra.mrb[2].mxu0 %vm46_vm0, %v25_v4 }
   0x9   :  { %470 = vmatprep.mubr.msk.f32.mxu0 %vm46_vm0, %v26_v5  ;;  %v257_v21 = vld [vmem:[#allocation2] sm:$0x1] }
   0xa   :  { %260 = vperm.xlu0 %559, %v257_v21  }
   0xc   :  { %471 = vmatmul.mubr.msk.f32.gmra.mrb[4].mxu0 %vm46_vm0, %v27_v6 }
   0xd   :  { %473 = vmatprep.mubr.msk.f32.mxu0 %vm46_vm0, %v28_v7 }
  0x10   :  { %474 = vmatmul.mubr.msk.f32.gmra.mrb[6].mxu0 %vm46_vm0, %v29_v8 }
  0x11   :  { %476 = vmatprep.mubr.msk.f32.mxu0 %vm46_vm0, %v30_v9 }
  0x14   :  { %477 = vmatmul.mubr.msk.f32.gmra.mrb[8].mxu0 %vm46_vm0, %v31_v10 }
  0x15   :  { %479 = vmatprep.mubr.msk.f32.mxu0 %vm46_vm0, %v32_v11 }
  0x18   :  { %480 = vmatmul.mubr.msk.f32.gmra.mrb[10].mxu0 %vm46_vm0, %v33_v12 }
  0x19   :  { %482 = vmatprep.mubr.msk.f32.mxu0 %vm46_vm0, %v34_v13 }
  0x1c   :  { %483 = vmatmul.mubr.msk.f32.gmra.mrb[12].mxu0 %vm46_vm0, %v35_v14 }
  0x1d   :  { %485 = vmatprep.mubr.msk.f32.mxu0 %vm46_vm0, %v36_v15 }
  0x20   :  { %486 = vmatmul.mubr.msk.f32.gmra.mrb[14].mxu0 %vm46_vm0, %v37_v16  ;;  %v256_v16 = vld [vmem:[%s708_s3] sm:$0x1] }
  0x89   :  { %v261_v21 = vpop.permute.xlu0 %260 }
  0xd7   :  { %v466_v23 = vpop.f32.mrb[0].mxu0 }
  0xd8   :  { %v167_v24 = vadd.f32 %v466_v23, %v394_v22  ;;  %v161_v25 = vpop.f32.mrb[1].mxu0 }
  0xd9   :  { %v162_v26 = vadd.f32 %v394_v22, %v161_v25 }
  0xda   :  { %v241_v27 = vmax.f32 %v167_v24, 0.0 }
  0xdb   :  { %v240_v28 = vmax.f32 %v162_v26, 0.0  ;;  %v469_v29 = vpop.f32.mrb[2].mxu0 }
  0xdc   :  { %v177_v30 = vadd.f32 %v469_v29, %v394_v22  ;;  %v171_v31 = vpop.f32.mrb[3].mxu0 }
  0xdd   :  { %v524_v33 = vpack.c.bf16 %v241_v27, %v240_v28  ;;  %v172_v34 = vadd.f32 %v394_v22, %v171_v31 }
  0xde   :  { %v243_v35 = vmax.f32 %v177_v30, 0.0 }
  0xdf   :  { %v242_v36 = vmax.f32 %v172_v34, 0.0  ;;  %526 = vmatpush3.bf16.xpose.msk.msra.mxu1 %vm670_vm3, %v524_v33  ;;  %v472_v37 = vpop.f32.mrb[4].mxu0 }
  0xe0   :  { %v187_v38 = vadd.f32 %v472_v37, %v394_v22  ;;  %527 = vmatprep.subr.bf16.mxu1 %v560_v17  ;;  %v181_v39 = vpop.f32.mrb[5].mxu0 }
  0xe1   :  { %v528_v40 = vpack.c.bf16 %v243_v35, %v242_v36  ;;  %v182_v41 = vadd.f32 %v394_v22, %v181_v39 }
  0xe2   :  { %v245_v42 = vmax.f32 %v187_v38, 0.0 }
  0xe3   :  { %v244_v43 = vmax.f32 %v182_v41, 0.0  ;;  %v475_v44 = vpop.f32.mrb[6].mxu0 }
  0xe4   :  { %v197_v45 = vadd.f32 %v475_v44, %v394_v22  ;;  %v191_v46 = vpop.f32.mrb[7].mxu0 }
  0xe5   :  { %v532_v47 = vpack.c.bf16 %v245_v42, %v244_v43  ;;  %v192_v48 = vadd.f32 %v394_v22, %v191_v46 }
  0xe6   :  { %v247_v49 = vmax.f32 %v197_v45, 0.0 }
  0xe7   :  { %530 = vmatpush3.bf16.xpose.msk.msra.mxu1 %vm670_vm3, %v528_v40  ;;  %v246_v50 = vmax.f32 %v192_v48, 0.0  ;;  %v478_v51 = vpop.f32.mrb[8].mxu0 }
  0xe8   :  { %531 = vmatprep.subr.bf16.mxu1 %v560_v17  ;;  %v207_v52 = vadd.f32 %v478_v51, %v394_v22  ;;  %v201_v53 = vpop.f32.mrb[9].mxu0 }
  0xe9   :  { %v536_v54 = vpack.c.bf16 %v247_v49, %v246_v50  ;;  %v202_v55 = vadd.f32 %v394_v22, %v201_v53 }
  0xea   :  { %v249_v56 = vmax.f32 %v207_v52, 0.0 }
  0xeb   :  { %v248_v57 = vmax.f32 %v202_v55, 0.0  ;;  %v481_v58 = vpop.f32.mrb[10].mxu0 }
  0xec   :  { %v217_v59 = vadd.f32 %v481_v58, %v394_v22  ;;  %v211_v60 = vpop.f32.mrb[11].mxu0 }
  0xed   :  { %v540_v61 = vpack.c.bf16 %v249_v56, %v248_v57  ;;  %v212_v62 = vadd.f32 %v394_v22, %v211_v60 }
  0xee   :  { %v251_v63 = vmax.f32 %v217_v59, 0.0 }
  0xef   :  { %534 = vmatpush3.bf16.xpose.msk.msra.mxu1 %vm670_vm3, %v532_v47  ;;  %v250_v0 = vmax.f32 %v212_v62, 0.0  ;;  %v484_v1 = vpop.f32.mrb[12].mxu0 }
  0xf0   :  { %535 = vmatprep.subr.bf16.mxu1 %v560_v17  ;;  %v227_v2 = vadd.f32 %v484_v1, %v394_v22  ;;  %v221_v3 = vpop.f32.mrb[13].mxu0 }
  0xf1   :  { %v544_v4 = vpack.c.bf16 %v251_v63, %v250_v0  ;;  %v222_v5 = vadd.f32 %v394_v22, %v221_v3 }
  0xf2   :  { %v253_v6 = vmax.f32 %v227_v2, 0.0 }
  0xf3   :  { %v252_v7 = vmax.f32 %v222_v5, 0.0  ;;  %v487_v8 = vpop.f32.mrb[14].mxu0 }
  0xf4   :  { %v237_v9 = vadd.f32 %v487_v8, %v394_v22  ;;  %v231_v10 = vpop.f32.mrb[15].mxu0 }
  0xf5   :  { %v548_v11 = vpack.c.bf16 %v253_v6, %v252_v7  ;;  %v232_v12 = vadd.f32 %v394_v22, %v231_v10  ;;  %v266_v22 = vrot.slane %v261_v21, %v265_v20 }
  0xf6   :  { %v255_v13 = vmax.f32 %v237_v9, 0.0 }
  0xf7   :  { %538 = vmatpush3.bf16.xpose.msk.msra.mxu1 %vm670_vm3, %v536_v54  ;;  %v254_v14 = vmax.f32 %v232_v12, 0.0 }
  0xf8   :  { %539 = vmatprep.subr.bf16.mxu1 %v560_v17 }
  0xf9   :  { %v552_v15 = vpack.c.bf16 %v255_v13, %v254_v14 }
  0xff   :  { %542 = vmatpush3.bf16.xpose.msk.msra.mxu1 %vm670_vm3, %v540_v61 }
 0x100   :  { %543 = vmatprep.subr.bf16.mxu1 %v560_v17 }
 0x107   :  { %546 = vmatpush3.bf16.xpose.msk.msra.mxu1 %vm670_vm3, %v544_v4 }
 0x108   :  { %547 = vmatprep.subr.bf16.mxu1 %v560_v17 }
 0x10f   :  { %550 = vmatpush3.bf16.xpose.msk.msra.mxu1 %vm670_vm3, %v548_v11 }
 0x110   :  { %551 = vmatprep.subr.bf16.mxu1 %v560_v17 }
 0x117   :  { %554 = vmatpush3.bf16.xpose.msk.msra.mxu1 %vm670_vm3, %v552_v15 }
 0x11e   :  { %521 = vmatmul.mubr.msk.f32.vlgmr.msra.gmra.mrb[0].mxu1 %vm267_vm2, %v256_v16 }
 0x1f1   :  { %v385_v23 = vpop.f32.mrb[0].mxu1 }
 0x1f2   :  { %v386_v24 = vadd.f32 %v385_v23, %v266_v22  ;;  %v522_v25 = vpop.f32.mrb[1].mxu1 }
 0x1f4   :  { %389 = vst [vmem:[%s709_s5] sm:$0x1] %v386_v24 }

</bundles_post_ra>
